<compile_context>
chip_gen: v5e
topology: v5e:2x2
jax: 0.10.0
libtpu: 0.0.40
codegen_flags: <defaults>
</compile_context>

<pallas_src>
import functools
import math

import jax
import jax.numpy as jnp
from jax.experimental import pallas as pl
from jax.experimental.pallas import tpu as pltpu


def _gen_sigmoid_kernel(x_ref, beta_ref, bias_ref, o_ref, *, nonlin: str):
    x = x_ref[...]               # (tb, td) tile
    beta = beta_ref[...]         # (1, td) -> broadcasts over sublanes
    bias = bias_ref[...]         # (1, td)
    c0 = jax.nn.sigmoid(bias)    # one (1, td) row of EUP work per tile (negligible)
    if nonlin == "logsigm":
        z = jnp.log1p(x) * beta + bias
    else:  # "sigm"
        z = x * beta + bias
    o_ref[...] = (jax.nn.sigmoid(z) - c0).astype(o_ref.dtype)


def _sublane_rows(itemsize):
    # Sub-32-bit dtypes pack along sublanes: bf16 -> 16 rows/vreg, int8/fp8 -> 32.
    return {4: 8, 2: 16, 1: 32}.get(itemsize, 8)


def _vmem_budget_and_limit():
    phys = 128 << 20
    try:
        phys = int(pltpu.get_tpu_info().vmem_capacity_bytes)
    except Exception:
        pass
    # ~1/4 of physical VMEM for the 4 double-buffered x/out tiles (beta/bias
    # tiles are tiny): v5e/v6e (128 MiB) -> 24 MiB, v7x (64 MiB per TC) -> 16 MiB.
    budget = max(8 << 20, min(phys // 4, 24 << 20))
    limit = min(phys // 2, budget + (8 << 20))
    return budget, limit


def _num_tensorcores():
    try:
        kind = jax.devices()[0].device_kind.lower()
        if "v7" in kind or "7x" in kind:
            return 2
    except Exception:
        pass
    return 1


def _pick_tiles(n_rows, n_cols, itemsize, budget, sublane, num_cores):
    """Pick (row_tile, col_tile) so 2x double-buffered x/out tiles fit budget."""
    # Column (lane) tiling only when even a minimal sublane-height tile pair
    # would blow the budget (very wide D). Keep col tile a multiple of 128.
    td = n_cols
    if 4 * n_cols * itemsize * sublane > budget and n_cols > 128:
        td = (budget // (4 * itemsize * sublane)) // 128 * 128
        td = max(128, min(td, n_cols))
    per_row = 4 * td * itemsize          # (x tile + out tile) x 2 pipeline buffers
    tb = max(1, budget // max(per_row, 1))
    tb = min(tb, n_rows)
    # v7x: ensure the "parallel" batch axis has >= 2 balanced steps so it can
    # shard across both TensorCores. Single-TC chips skip this cap.
    if num_cores > 1 and n_rows > num_cores * sublane:
        tb = min(tb, pl.cdiv(n_rows, num_cores))
    if tb < n_rows:
        tb = max(sublane, (tb // sublane) * sublane)   # dtype-aware sublane align
    return tb, td


def _call_kernel(x, beta, bias, nonlin, out_dtype, budget_override=None):
    B, D = x.shape
    itemsize = max(x.dtype.itemsize, jnp.dtype(out_dtype).itemsize)
    budget, vmem_limit = _vmem_budget_and_limit()
    if budget_override is not None:
        budget = budget_override
    sublane = _sublane_rows(itemsize)
    tb, td = _pick_tiles(B, D, itemsize, budget, sublane, _num_tensorcores())

    kernel = functools.partial(_gen_sigmoid_kernel, nonlin=nonlin)
    return pl.pallas_call(
        kernel,
        out_shape=jax.ShapeDtypeStruct((B, D), out_dtype),
        grid_spec=pltpu.PrefetchScalarGridSpec(
            num_scalar_prefetch=0,
            grid=(pl.cdiv(B, tb), pl.cdiv(D, td)),
            in_specs=[
                pl.BlockSpec((tb, td), lambda i, j: (i, j)),
                pl.BlockSpec((1, td), lambda i, j: (0, j)),
                pl.BlockSpec((1, td), lambda i, j: (0, j)),
            ],
            out_specs=pl.BlockSpec((tb, td), lambda i, j: (i, j)),
        ),
        compiler_params=pltpu.CompilerParams(
            dimension_semantics=("parallel", "parallel"),
            vmem_limit_bytes=int(vmem_limit),
        ),
    )(x, beta, bias)


def generalized_sigmoid(x, beta, bias, nonlin="sigmoid", _vmem_budget=None):
    """x: (B, D); beta, bias: (1, D).

    Like the torch module, any nonlin other than 'logsigm'/'sigm' (including
    the default 'sigmoid') is the identity path.
    """
    if nonlin not in ("logsigm", "sigm"):
        # Identity: returning x is free; no kernel launch, no HBM traffic.
        return x

    B, D = x.shape
    assert beta.shape == (1, D) and bias.shape == (1, D)
    out_dtype = jnp.result_type(x.dtype, beta.dtype, bias.dtype)

    # Lane-dense folding: fold `reps` rows into the lane axis so the output's
    # minor dim is a multiple of 128 (full-lane vst instead of masked vst.msk).
    # reshape on contiguous row-major x is free; beta/bias tiles are tiny.
    if D % 128 != 0:
        reps = math.lcm(D, 128) // D
        if reps > 1 and B % reps == 0:
            x2 = x.reshape(B // reps, reps * D)
            beta2 = jnp.tile(beta, (1, reps))
            bias2 = jnp.tile(bias, (1, reps))
            out = _call_kernel(x2, beta2, bias2, nonlin, out_dtype, _vmem_budget)
            return out.reshape(B, D)

    return _call_kernel(x, beta, bias, nonlin, out_dtype, _vmem_budget)


def _reference(x, beta, bias, nonlin):
    if nonlin == "logsigm":
        return jax.nn.sigmoid(jnp.log1p(x) * beta + bias) - jax.nn.sigmoid(bias)
    elif nonlin == "sigm":
        return jax.nn.sigmoid(x * beta + bias) - jax.nn.sigmoid(bias)
    else:
        return x


if __name__ == "__main__":
    # Module __init__: beta = ones(1, dim), bias = zeros(1, dim); add small
    # deterministic perturbations so the compute is non-trivial.
    key = jax.random.PRNGKey(0)

    ok = True
    # (8, 32)  : lane-dense folding (reps=4 -> 128 lanes).
    # (24, 48) : generalized folding (reps=8 -> 384 lanes).
    # (7, 33)  : non-foldable fallback path (masked stores, full-dim block).
    # (16, 256): D multiple of 128, no folding.
    # (256,384): tiny budget override -> exercises 2-D (row x 128-lane) tiling
    #            and a multi-step pipelined grid.
    cases = (
        (8, 32, None),
        (24, 48, None),
        (7, 33, None),
        (16, 256, None),
        (256, 384, 16 * 1024),
    )
    for (batch, dim, budget) in cases:
        kx, kb, kc, key = jax.random.split(key, 4)
        # Doses are non-negative (log1p domain), as in CPA dose encoding.
        x = jax.random.uniform(kx, (batch, dim), dtype=jnp.float32,
                               minval=0.0, maxval=2.0)
        beta = jnp.ones((1, dim), jnp.float32) + \
            0.1 * jax.random.normal(kb, (1, dim), jnp.float32)
        bias = jnp.zeros((1, dim), jnp.float32) + \
            0.1 * jax.random.normal(kc, (1, dim), jnp.float32)

        for nonlin in ("logsigm", "sigm", "linear", "sigmoid"):
            out = generalized_sigmoid(x, beta, bias, nonlin=nonlin,
                                      _vmem_budget=budget)
            out = jax.block_until_ready(out)
            ref = _reference(x, beta, bias, nonlin)
            if not jnp.allclose(out, ref, atol=1e-5, rtol=1e-5):
                ok = False
                print(f"MISMATCH shape=({batch},{dim}) nonlin={nonlin}")

    if ok:
        print("KERNEL_OK")
</pallas_src>

<mosaic_0001>
module attributes {stable_mosaic.version = 11 : i64} {
  func.func @_gen_sigmoid_kernel(%arg0: i32, %arg1: i32, %arg2: memref<2x128xf32, #tpu.memory_space<vmem>>, %arg3: memref<1x128xf32, #tpu.memory_space<vmem>>, %arg4: memref<1x128xf32, #tpu.memory_space<vmem>>, %arg5: memref<2x128xf32, #tpu.memory_space<vmem>>) attributes {dimension_semantics = [#tpu.dimension_semantics<parallel>, #tpu.dimension_semantics<parallel>], iteration_bounds = array<i64: 1, 1>, scalar_prefetch = 0 : i64, scratch_operands = 0 : i64, tpu.core_type = #tpu.core_type<tc>, window_params = [{transform_indices = @transform_0, window_bounds = array<i64: 2, 128>}, {transform_indices = @transform_1, window_bounds = array<i64: 1, 128>}, {transform_indices = @transform_2, window_bounds = array<i64: 1, 128>}, {transform_indices = @transform_3, window_bounds = array<i64: 2, 128>}]} {
    %c0 = arith.constant 0 : index
    %c0_0 = arith.constant 0 : index
    %0 = vector.load %arg2[%c0, %c0_0] : memref<2x128xf32, #tpu.memory_space<vmem>>, vector<2x128xf32>
    %c0_1 = arith.constant 0 : index
    %c0_2 = arith.constant 0 : index
    %1 = vector.load %arg3[%c0_1, %c0_2] : memref<1x128xf32, #tpu.memory_space<vmem>>, vector<1x128xf32>
    %c0_3 = arith.constant 0 : index
    %c0_4 = arith.constant 0 : index
    %2 = vector.load %arg4[%c0_3, %c0_4] : memref<1x128xf32, #tpu.memory_space<vmem>>, vector<1x128xf32>
    %3 = arith.negf %2 : vector<1x128xf32>
    %4 = math.exp %3 : vector<1x128xf32>
    %cst = arith.constant 1.000000e+00 : f32
    %5 = vector.broadcast %cst : f32 to vector<1x128xf32>
    %6 = arith.addf %5, %4 : vector<1x128xf32>
    %7 = arith.divf %5, %6 : vector<1x128xf32>
    %8 = math.log1p %0 : vector<2x128xf32>
    %9 = vector.broadcast %1 : vector<1x128xf32> to vector<2x128xf32>
    %10 = arith.mulf %8, %9 : vector<2x128xf32>
    %11 = vector.broadcast %2 : vector<1x128xf32> to vector<2x128xf32>
    %12 = arith.addf %10, %11 : vector<2x128xf32>
    %13 = arith.negf %12 : vector<2x128xf32>
    %14 = math.exp %13 : vector<2x128xf32>
    %cst_5 = arith.constant 1.000000e+00 : f32
    %15 = vector.broadcast %cst_5 : f32 to vector<2x128xf32>
    %16 = arith.addf %15, %14 : vector<2x128xf32>
    %17 = arith.divf %15, %16 : vector<2x128xf32>
    %18 = vector.broadcast %7 : vector<1x128xf32> to vector<2x128xf32>
    %19 = arith.subf %17, %18 : vector<2x128xf32>
    %c0_6 = arith.constant 0 : index
    %c0_7 = arith.constant 0 : index
    %20 = vector.load %arg5[%c0_6, %c0_7] : memref<2x128xf32, #tpu.memory_space<vmem>>, vector<2x128xf32>
    tpu.vector_store %arg5[%c0_6, %c0_7], %19 {strides = array<i32>} : memref<2x128xf32, #tpu.memory_space<vmem>>, vector<2x128xf32>,
    return
  }
  func.func @transform_0(%arg0: i32, %arg1: i32) -> (i32, i32) {
    %c0_i32 = arith.constant 0 : i32
    return %arg0, %arg1 : i32, i32
  }
  func.func @transform_1(%arg0: i32, %arg1: i32) -> (i32, i32) {
    %c0_i32 = arith.constant 0 : i32
    %c0_i32_0 = arith.constant 0 : i32
    return %c0_i32, %arg1 : i32, i32
  }
  func.func @transform_2(%arg0: i32, %arg1: i32) -> (i32, i32) {
    %c0_i32 = arith.constant 0 : i32
    %c0_i32_0 = arith.constant 0 : i32
    return %c0_i32, %arg1 : i32, i32
  }
  func.func @transform_3(%arg0: i32, %arg1: i32) -> (i32, i32) {
    %c0_i32 = arith.constant 0 : i32
    return %arg0, %arg1 : i32, i32
  }
}

</mosaic_0001>

<bundles_post_ra>
// kernel: tpu_custom_call.1
= control target key start
LH: loop header
LB: loop body
LE: loop exit
PB: predicated region body
PF: predicated region fallthrough
CT: control target
= control target key end

     0   :  { %8 = vsyncpa [#allocation3], 0  ;;  %s257_s0 = inlined_call_operand.hbm [shape: f32[2,128], index: 0, kind: input, shape index: {}]   ;;  %s258_s1 = inlined_call_operand.hbm [shape: f32[1,128], index: 1, kind: input, shape index: {}]   ;;  %s259_s2 = inlined_call_operand.vmem [shape: f32[1,128], index: 2, kind: input, shape index: {}]   ;;  %s260_s3 = inlined_call_operand.hbm [shape: f32[2,128], index: 3, kind: output, shape index: {}]  }
   0x1   :  { %9 = vsyncpa [#allocation6], 0 }
   0x2   :  { %10 = vsyncpa [#allocation4], 0  ;;  %s16_s14 = sshll.u32 %s257_s0, 4  ;;  %s219_s15 = smov [#allocation2]   ;;  %s17_s14 = int_to_ptr.hbm [resolvable:$true] %s16_s14 }
   0x3   :  { %s18_s16 = sshll.u32 %s219_s15, 4  ;;  %s27_s19 = sshll.u32 %s258_s1, 4  ;;  %s19_s16 = int_to_ptr.vmem [resolvable:$true] %s18_s16  ;;  %s28_s19 = int_to_ptr.hbm [resolvable:$true] %s27_s19 }
   0x4   :  { %21 = dma.hbm_to_vmem [thread:$0]  %s17_s14, 32, %s19_s16, [#allocation3]  }
   0x5   :  { %s220_s20 = smov [#allocation5]  }
   0x6   :  { %s29_s21 = sshll.u32 %s220_s20, 4  ;;  %s30_s21 = int_to_ptr.vmem [resolvable:$true] %s29_s21 }
   0x7   :  { %32 = dma.hbm_to_vmem [thread:$0]  %s28_s19, 16, %s30_s21, [#allocation6]  }
   0x8   :  { %213 = dma.done.wait [#allocation3], 32  }
   0x9   :  { %214 = vsyncadd [#allocation3], 4294967264 }
   0xa   :  { %215 = dma.done.wait [#allocation6], 16  }
   0xb   :  { %216 = vsyncadd [#allocation6], 4294967280  ;;  %v43_v0 = vld [vmem:[#allocation2] sm:$0x3]  ;;  %v129_v11 = vld [vmem:[#allocation5] ss:$0 sm:$0xff] }
   0xc   :  { %v45_v1 = vld [vmem:[%s259_s2] sm:$0x1]  ;;  %v65_v3 = vadd.f32 1.0, %v43_v0  ;;  %v68_v4 = vmul.f32 -0.5, %v43_v0  ;;  %v71_v6 = vand.u32 2147483647, %v43_v0 }
   0xd   :  { %v124_v2 = vmul.f32 -1.442695, %v45_v1  ;;  %v130_v13 = vld [vmem:[%s259_s2] ss:$0 sm:$0xff]  ;;  %s221_s2 = smov [#allocation7]   ;;  %s113_s27 = sshll.u32 %s260_s3, 4  ;;  %s114_s27 = int_to_ptr.hbm [resolvable:$true] %s113_s27 }
   0xe   :  { %v69_v5 = vadd.f32 1.0, %v68_v4  ;;  %vm72_vm0 = vcmp.lt.f32.partialorder %v71_v6, 0.0004427343  ;;  %s111_s24 = sshll.u32 %s221_s2, 4  ;;  %s112_s24 = int_to_ptr.vmem [resolvable:$true] %s111_s24 }
   0xf   :  { %131 = vpow2.f32 %v124_v2 }
  0x10   :  { %133 = vlog2.f32 %v65_v3  ;;  %v70_v8 = vmul.f32 %v69_v5, %v43_v0 }
  0x15   :  { %v132_v7 = vpop.eup %131 }
  0x16   :  { %v134_v9 = vpop.eup %133  ;;  %v49_v10 = vadd.f32 1.0, %v132_v7 }
  0x17   :  { %v67_v12 = vmul.f32 0.6931472, %v134_v9 }
  0x18   :  { %135 = vrcp.f32 %v49_v10  ;;  %vm55_vm1 = vweird.f32 %v49_v10  ;;  %v61_v24 = vand.u32 2147483648, %v49_v10  ;;  %v59_v26 = vand.u32 2147483647, %v49_v10 }
  0x19   :  { %v73_v14 = vsel %vm72_vm0, %v70_v8, %v67_v12 }
  0x1a   :  { %v77_v15 = vmul.f32 %v129_v11, %v73_v14  ;;  %v62_v28 = vor.u32 1.1754944e-38, %v61_v24  ;;  %vm60_vm4 = vcmp.eq.f32.partialorder %v59_v26, 8.507059e+37 }
  0x1c   :  { %v81_v16 = vadd.f32 %v130_v13, %v77_v15 }
  0x1e   :  { %v136_v17 = vpop.eup %135  ;;  %v125_v18 = vmul.f32 -1.442695, %v81_v16 }
  0x1f   :  { %v51_v19 = vmul.f32 %v136_v17, %v49_v10  ;;  %vm56_vm2 = vweird.f32 %v136_v17 }
  0x20   :  { %137 = vpow2.f32 %v125_v18  ;;  %vm57_vm3 = vmor %vm55_vm1, %vm56_vm2 }
  0x21   :  { %v52_v20 = vsub.f32 1.0, %v51_v19 }
  0x23   :  { %v53_v23 = vmul.f32 %v136_v17, %v52_v20 }
  0x25   :  { %v54_v25 = vadd.f32 %v136_v17, %v53_v23 }
  0x26   :  { %v138_v21 = vpop.eup %137 }
  0x27   :  { %v85_v22 = vadd.f32 1.0, %v138_v21  ;;  %v58_v29 = vsel %vm57_vm3, %v136_v17, %v54_v25 }
  0x28   :  { %v63_v34 = vsel %vm60_vm4, %v62_v28, %v58_v29 }
  0x29   :  { %139 = vrcp.f32 %v85_v22  ;;  %v97_v31 = vand.u32 2147483648, %v85_v22  ;;  %vm91_vm5 = vweird.f32 %v85_v22  ;;  %v95_v33 = vand.u32 2147483647, %v85_v22 }
  0x2a   :  { %v102_v38 = vperm.slane %v63_v34, 0 }
  0x2b   :  { %v98_v36 = vor.u32 1.1754944e-38, %v97_v31  ;;  %vm96_vm8 = vcmp.eq.f32.partialorder %v95_v33, 8.507059e+37 }
  0x2f   :  { %v140_v27 = vpop.eup %139 }
  0x30   :  { %v87_v30 = vmul.f32 %v140_v27, %v85_v22  ;;  %vm92_vm6 = vweird.f32 %v140_v27 }
  0x31   :  { %vm93_vm7 = vmor %vm91_vm5, %vm92_vm6 }
  0x32   :  { %v88_v32 = vsub.f32 1.0, %v87_v30 }
  0x34   :  { %v89_v35 = vmul.f32 %v140_v27, %v88_v32 }
  0x36   :  { %v90_v37 = vadd.f32 %v140_v27, %v89_v35 }
  0x38   :  { %v94_v39 = vsel %vm93_vm7, %v140_v27, %v90_v37 }
  0x39   :  { %v99_v40 = vsel %vm96_vm8, %v98_v36, %v94_v39 }
  0x3a   :  { %v104_v41 = vsub.f32 %v99_v40, %v102_v38 }
  0x3c   :  { %105 = vst [vmem:[#allocation7] sm:$0x3] %v104_v41 }
  0x3d   :  { %116 = dma.vmem_to_hbm [thread:$0]  %s112_s24, 32, %s114_s27, [#allocation4]  }
  0x3e   :  { %217 = dma.done.wait [#allocation4], 32  }
  0x3f   :  { %218 = vsyncadd [#allocation4], 4294967264 }
  0x40   :  { %121 = vsyncpa [#allocation3], 1 }
  0x41   :  { %122 = vsyncpa [#allocation6], 1 }
  0x42   :  { %123 = vsyncpa [#allocation4], 1 }

</bundles_post_ra>
